<compile_context>
chip_gen: v5e
topology: v5e:2x2
jax: 0.10.0
libtpu: 0.0.40
codegen_flags: <defaults>
</compile_context>

<pallas_src>
import math

import jax
import jax.numpy as jnp
from jax import lax
from jax.experimental import pallas as pl
from jax.experimental.pallas import tpu as pltpu


_NEG_FILL = -11111.0
# Full Python unroll of the per-step loop keeps every slice static (cheap views)
# without blowing instruction footprint / vreg live ranges (review item on
# large-trip-count unrolls).
_T_UNROLL_CAP = 16


def _make_kernel(*, n_stock, f_out, t_total, t_block, blocks_per_core):
    n = n_stock

    def kernel(x_ref, adj_ref, wcat_ref, w2_ref, bv_ref, b1_ref, b2_ref,
               out_ref, xw_ref):
        c = pl.program_id(0)                 # partial index ("parallel")
        b = pl.program_id(1)                 # time-block index within partial
        tb = c * blocks_per_core + b         # un-clamped global time-block index

        # Accumulator pattern: output block stays resident across the inner axis.
        @pl.when(b == 0)
        def _init():
            out_ref[...] = jnp.zeros_like(out_ref)

        # ---- One batched projection matmul for the whole time block ----
        x_flat = x_ref[...]                                       # [tB*N, F_in] bf16
        xw_ref[...] = jnp.dot(x_flat, wcat_ref[...],
                              preferred_element_type=jnp.float32)  # [tB*N, F_out+1]
        # All f2 logits for the block, directly as a lane-major row: [1, tB*N].
        f2_all = lax.dot_general(w2_ref[...], x_flat,
                                 (((1,), (1,)), ((), ())),
                                 preferred_element_type=jnp.float32)

        bv = bv_ref[...]                     # [N, F_out] f32
        b1 = b1_ref[...]                     # [N, 1]     f32 (pre-scaled)
        b2 = b2_ref[...]                     # [1, N]     f32 (pre-scaled)

        acc = jnp.zeros((n, f_out), jnp.float32)
        for t in range(t_block):             # static unroll -> static slices
            r0 = t * n
            xw = xw_ref[r0:r0 + n, :]                              # [N, F_out+1]
            v = xw[:, :f_out] + bv                                 # [N, F_out]
            f1 = xw[:, f_out:f_out + 1] + b1                       # [N, 1]
            f2 = f2_all[:, r0:r0 + n] + b2                         # [1, N]

            adj_t = adj_ref[t]                                     # [N, N] bf16 0/1
            s = f1 + f2                                            # pre-scaled logits
            s = jnp.where(adj_t != 0, s, _NEG_FILL)                # masked fill only

            m = jnp.max(s, axis=-1, keepdims=True)
            e = jnp.exp(s - m)
            p = e * pl.reciprocal(jnp.sum(e, axis=-1, keepdims=True), approx=True)

            o = jnp.dot(p.astype(jnp.bfloat16), v.astype(jnp.bfloat16),
                        preferred_element_type=jnp.float32)        # [N, F_out]

            # Exclude padded / out-of-range time steps (ragged tail, no jnp.pad).
            valid = (tb * t_block + t) < t_total
            acc = acc + jnp.where(valid, o, 0.0)

        out_ref[0] += acc

    return kernel


def graph_attention_forward(x, adj, params, out_features, *, t_block=None):
    """x: [T, N, F_in] float32, adj: [T, N, N] float32 (0/1 mask)."""
    T, N, F_in = x.shape
    F_out = out_features
    inv_scale = 1.0 / math.sqrt(float(F_out))

    wq, bq = params["wq"], params["bq"]
    wk, bk = params["wk"], params["bk"]
    wv, bv = params["wv"], params["bv"]
    wf1, bf1 = params["wf1"], params["bf1"]
    wf2, bf2 = params["wf2"], params["bf2"]
    wffn, bffn = params["wffn"], params["bffn"]

    # ---- Fold q/k projections AND the 1/sqrt(F_out) scale host-side ----
    #   f1 = ((x Wq^T + bq) wf1^T + bf1)/scale = x w1_eff + b1_eff
    #   f2 analogous via wk/wf2; used as a row.
    w1_eff = (wf1 @ wq).T * inv_scale                                # [F_in, 1]
    b1_eff = ((bq @ wf1.T) + bf1) * inv_scale                        # [N, 1]
    w2_row = ((wf2 @ wk) * inv_scale).astype(jnp.bfloat16)           # [1, F_in]
    b2_row = (((bk @ wf2.T) + bf2) * inv_scale).T                    # [1, N]
    # Fused, pre-transposed weight block: [Wv^T | w1_eff]  (one wide matmul).
    w_cat = jnp.concatenate([wv.T, w1_eff], axis=1).astype(jnp.bfloat16)
    bv_f = bv.astype(jnp.float32)
    b1_eff = b1_eff.astype(jnp.float32)
    b2_row = b2_row.astype(jnp.float32)

    # adj_ = clamp(adj + I) once; 0/1 mask is exact in bf16 and halves adj DMA.
    adj_ = adj + jnp.eye(N, dtype=adj.dtype)[None]
    adj_ = jnp.where(adj_ > 1.0, adj_ - 1.0, adj_).astype(jnp.bfloat16)

    # Pre-flatten x so the kernel needs no in-kernel reshape (block = t_block*N rows).
    x_flat = x.astype(jnp.bfloat16).reshape(T * N, F_in)

    # ---- Generation-aware VMEM budget (64 MiB v7x vs 128 MiB v5e/v6e) ----
    try:
        vmem_cap = int(pltpu.get_tpu_info().vmem_capacity_bytes)
    except Exception:  # conservative fallback, safe on every generation
        vmem_cap = 64 << 20
    vmem_limit = int(min((vmem_cap * 3) // 4, 96 << 20))
    if t_block is None:
        per_step = 2 * 2 * (N * N + N * F_in)      # double-buffered bf16 adj + x
        t_block = min((vmem_limit // 2) // max(per_step, 1),
                      _T_UNROLL_CAP,
                      pl.cdiv(T, 2))               # >= 2 blocks so v7x uses both TCs
    t_block = max(1, min(int(t_block), T))

    nb = pl.cdiv(T, t_block)                       # number of real time blocks
    C = 2 if nb >= 2 else 1                        # partials ("parallel" axis)
    B = pl.cdiv(nb, C)                             # time blocks per partial

    # Clamp the block index so over-run iterations re-read the last real block
    # (their contribution is zeroed by the in-kernel validity guard) -> no jnp.pad.
    def x_map(c, b):
        return (jnp.minimum(c * B + b, nb - 1), 0)

    def adj_map(c, b):
        return (jnp.minimum(c * B + b, nb - 1), 0, 0)

    def const_map(c, b):
        return (0, 0)

    partials = pl.pallas_call(
        _make_kernel(n_stock=N, f_out=F_out, t_total=T,
                     t_block=t_block, blocks_per_core=B),
        out_shape=jax.ShapeDtypeStruct((C, N, F_out), jnp.float32),
        grid=(C, B),
        in_specs=[
            pl.BlockSpec((t_block * N, F_in), x_map),     # x time-block (flattened)
            pl.BlockSpec((t_block, N, N), adj_map),       # adj_ time-block
            pl.BlockSpec((F_in, F_out + 1), const_map),   # [Wv^T | w1_eff]
            pl.BlockSpec((1, F_in), const_map),           # w2_eff row
            pl.BlockSpec((N, F_out), const_map),          # value bias
            pl.BlockSpec((N, 1), const_map),              # effective f1 bias
            pl.BlockSpec((1, N), const_map),              # effective f2 bias (row)
        ],
        out_specs=pl.BlockSpec((1, N, F_out), lambda c, b: (c, 0, 0)),
        scratch_shapes=[pltpu.VMEM((t_block * N, F_out + 1), jnp.float32)],
        compiler_params=pltpu.CompilerParams(
            dimension_semantics=("parallel", "arbitrary"),
            vmem_limit_bytes=vmem_limit),
    )(x_flat, adj_, w_cat, w2_row, bv_f, b1_eff, b2_row)

    pre = jnp.sum(partials, axis=0)                # C <= 2 -> trivial reduce
    # Deferred FFN (linear): sum_t ffn(o_t) = (sum_t o_t) @ Wffn^T + T * bffn.
    return pre @ wffn.T + float(T) * bffn


def reference_forward(x, adj, params, out_features):
    """Pure-JAX float32 mirror of the PyTorch forward."""
    T, N, _ = x.shape
    scale = math.sqrt(float(out_features))
    total = jnp.zeros((N, out_features), jnp.float32)
    for i in range(T):
        xi = x[i]
        q = xi @ params["wq"].T + params["bq"]
        k = xi @ params["wk"].T + params["bk"]
        v = xi @ params["wv"].T + params["bv"]
        f1 = q @ params["wf1"].T + params["bf1"]          # [N, 1]
        f2 = k @ params["wf2"].T + params["bf2"]          # [N, 1]
        adj_ = adj[i] + jnp.eye(N, dtype=jnp.float32)
        adj_ = jnp.where(adj_ > 1.0, adj_ - 1.0, adj_)
        s = (f1 + f2.T) * adj_ / scale
        s = jnp.where(adj_ == 0.0, -11111.0, s)
        p = jax.nn.softmax(s, axis=-1)
        o = p @ v
        total = total + (o @ params["wffn"].T + params["bffn"])
    return total


if __name__ == "__main__":
    # Small, forward-consistent shapes.
    T = 6            # number of time steps (= len(adj.keys()))
    num_stock = 16   # N
    in_features = 8
    out_features = 32

    key = jax.random.PRNGKey(0)
    keys = jax.random.split(key, 16)

    params = {
        "wq":   0.1 * jax.random.normal(keys[0], (out_features, in_features), jnp.float32),
        "bq":   0.01 * jax.random.normal(keys[1], (num_stock, out_features), jnp.float32),
        "wk":   0.1 * jax.random.normal(keys[2], (out_features, in_features), jnp.float32),
        "bk":   0.01 * jax.random.normal(keys[3], (num_stock, out_features), jnp.float32),
        "wv":   0.1 * jax.random.normal(keys[4], (out_features, in_features), jnp.float32),
        "bv":   0.01 * jax.random.normal(keys[5], (num_stock, out_features), jnp.float32),
        "wf1":  0.1 * jax.random.normal(keys[6], (1, out_features), jnp.float32),
        "bf1":  0.01 * jax.random.normal(keys[7], (1, 1), jnp.float32),
        "wf2":  0.1 * jax.random.normal(keys[8], (1, out_features), jnp.float32),
        "bf2":  0.01 * jax.random.normal(keys[9], (1, 1), jnp.float32),
        "wffn": 0.1 * jax.random.normal(keys[10], (out_features, out_features), jnp.float32),
        "bffn": 0.01 * jax.random.normal(keys[11], (1, out_features), jnp.float32),
    }

    x = jax.random.normal(keys[12], (T, num_stock, in_features), jnp.float32)
    adj = (jax.random.uniform(keys[13], (T, num_stock, num_stock)) > 0.5).astype(jnp.float32)

    ref = reference_forward(x, adj, params, out_features)

    # Default heuristic: two time blocks -> two partials (both v7x TCs busy).
    out = jax.block_until_ready(graph_attention_forward(x, adj, params, out_features))
    assert out.shape == (num_stock, out_features)
    # bf16 matmul inputs (the PyTorch module itself uses fp16 for the attention matmul)
    # -> tolerance relaxed vs a pure-f32 reference.
    assert jnp.allclose(out, ref, atol=1e-2, rtol=1e-2), float(jnp.max(jnp.abs(out - ref)))

    # Ragged tail block (T % t_block != 0): exercises clamped index_map + validity guard.
    out2 = jax.block_until_ready(
        graph_attention_forward(x, adj, params, out_features, t_block=4))
    assert jnp.allclose(out2, ref, atol=1e-2, rtol=1e-2), float(jnp.max(jnp.abs(out2 - ref)))

    # Single-block / single-partial path (C == 1).
    out3 = jax.block_until_ready(
        graph_attention_forward(x, adj, params, out_features, t_block=6))
    assert jnp.allclose(out3, ref, atol=1e-2, rtol=1e-2), float(jnp.max(jnp.abs(out3 - ref)))

    print("KERNEL_OK")
</pallas_src>

<mosaic_0001>
module attributes {stable_mosaic.version = 11 : i64} {
  func.func @kernel(%arg0: i32, %arg1: i32, %arg2: memref<48x8xbf16, #tpu.memory_space<vmem>>, %arg3: memref<3x16x16xbf16, #tpu.memory_space<vmem>>, %arg4: memref<8x33xbf16, #tpu.memory_space<vmem>>, %arg5: memref<1x8xbf16, #tpu.memory_space<vmem>>, %arg6: memref<16x32xf32, #tpu.memory_space<vmem>>, %arg7: memref<16x1xf32, #tpu.memory_space<vmem>>, %arg8: memref<1x16xf32, #tpu.memory_space<vmem>>, %arg9: memref<1x16x32xf32, #tpu.memory_space<vmem>>, %arg10: memref<48x33xf32, #tpu.memory_space<vmem>>) attributes {dimension_semantics = [#tpu.dimension_semantics<parallel>, #tpu.dimension_semantics<arbitrary>], iteration_bounds = array<i64: 2, 1>, scalar_prefetch = 0 : i64, scratch_operands = 1 : i64, tpu.core_type = #tpu.core_type<tc>, window_params = [{transform_indices = @transform_0, window_bounds = array<i64: 48, 8>}, {transform_indices = @transform_1, window_bounds = array<i64: 3, 16, 16>}, {pipeline_mode = #tpu.pipeline_mode<synchronous>, transform_indices = @transform_2, window_bounds = array<i64: 8, 33>}, {pipeline_mode = #tpu.pipeline_mode<synchronous>, transform_indices = @transform_3, window_bounds = array<i64: 1, 8>}, {pipeline_mode = #tpu.pipeline_mode<synchronous>, transform_indices = @transform_4, window_bounds = array<i64: 16, 32>}, {pipeline_mode = #tpu.pipeline_mode<synchronous>, transform_indices = @transform_5, window_bounds = array<i64: 16, 1>}, {pipeline_mode = #tpu.pipeline_mode<synchronous>, transform_indices = @transform_6, window_bounds = array<i64: 1, 16>}, {transform_indices = @transform_7, window_bounds = array<i64: 1, 16, 32>}]} {
    %c1_i32 = arith.constant 1 : i32
    %0 = arith.muli %arg0, %c1_i32 : i32
    %1 = arith.addi %0, %arg1 : i32
    %c0_i32 = arith.constant 0 : i32
    %2 = arith.cmpi eq, %arg1, %c0_i32 : i32
    %3 = arith.extui %2 : i1 to i32
    %c0_i32_0 = arith.constant 0 : i32
    %4 = arith.cmpi ne, %3, %c0_i32_0 : i32
    scf.if %4 {
      %cst_57 = arith.constant 0.000000e+00 : f32
      %126 = vector.broadcast %cst_57 : f32 to vector<1x16x32xf32>
      %c0_58 = arith.constant 0 : index
      %c0_59 = arith.constant 0 : index
      %c0_60 = arith.constant 0 : index
      %127 = vector.load %arg9[%c0_58, %c0_59, %c0_60] : memref<1x16x32xf32, #tpu.memory_space<vmem>>, vector<1x16x32xf32>
      tpu.vector_store %arg9[%c0_58, %c0_59, %c0_60], %126 {strides = array<i32>} : memref<1x16x32xf32, #tpu.memory_space<vmem>>, vector<1x16x32xf32>,
    } else {
    }
    %c0 = arith.constant 0 : index
    %c0_1 = arith.constant 0 : index
    %5 = vector.load %arg2[%c0, %c0_1] : memref<48x8xbf16, #tpu.memory_space<vmem>>, vector<48x8xbf16>
    %c0_2 = arith.constant 0 : index
    %c0_3 = arith.constant 0 : index
    %6 = vector.load %arg4[%c0_2, %c0_3] : memref<8x33xbf16, #tpu.memory_space<vmem>>, vector<8x33xbf16>
    %cst = arith.constant dense<0.000000e+00> : vector<48x33xf32>
    %7 = tpu.matmul %5, %6, %cst {dimension_numbers = #tpu.dot_dimension_numbers<[1], [0], [0], [1], [0, 0, 1, 1], [], []>} : vector<48x8xbf16>, vector<8x33xbf16>, vector<48x33xf32> -> vector<48x33xf32>
    %c0_4 = arith.constant 0 : index
    %c0_5 = arith.constant 0 : index
    %8 = vector.load %arg10[%c0_4, %c0_5] : memref<48x33xf32, #tpu.memory_space<vmem>>, vector<48x33xf32>
    tpu.vector_store %arg10[%c0_4, %c0_5], %7 {strides = array<i32>} : memref<48x33xf32, #tpu.memory_space<vmem>>, vector<48x33xf32>,
    %c0_6 = arith.constant 0 : index
    %c0_7 = arith.constant 0 : index
    %9 = vector.load %arg5[%c0_6, %c0_7] : memref<1x8xbf16, #tpu.memory_space<vmem>>, vector<1x8xbf16>
    %cst_8 = arith.constant dense<0.000000e+00> : vector<1x48xf32>
    %10 = tpu.matmul %9, %5, %cst_8 {dimension_numbers = #tpu.dot_dimension_numbers<[1], [1], [0], [0], [0, 0, 1, 0], [], []>} : vector<1x8xbf16>, vector<48x8xbf16>, vector<1x48xf32> -> vector<1x48xf32>
    %c0_9 = arith.constant 0 : index
    %c0_10 = arith.constant 0 : index
    %11 = vector.load %arg6[%c0_9, %c0_10] : memref<16x32xf32, #tpu.memory_space<vmem>>, vector<16x32xf32>
    %c0_11 = arith.constant 0 : index
    %c0_12 = arith.constant 0 : index
    %12 = vector.load %arg7[%c0_11, %c0_12] : memref<16x1xf32, #tpu.memory_space<vmem>>, vector<16x1xf32>
    %c0_13 = arith.constant 0 : index
    %c0_14 = arith.constant 0 : index
    %13 = vector.load %arg8[%c0_13, %c0_14] : memref<1x16xf32, #tpu.memory_space<vmem>>, vector<1x16xf32>
    %cst_15 = arith.constant 0.000000e+00 : f32
    %14 = vector.broadcast %cst_15 : f32 to vector<16x32xf32>
    %c0_16 = arith.constant 0 : index
    %c0_17 = arith.constant 0 : index
    %15 = vector.load %arg10[%c0_16, %c0_17] : memref<48x33xf32, #tpu.memory_space<vmem>>, vector<16x33xf32>
    %16 = vector.extract_strided_slice %15 {offsets = [0, 0], sizes = [16, 32], strides = [1, 1]} : vector<16x33xf32> to vector<16x32xf32>
    %17 = arith.addf %16, %11 : vector<16x32xf32>
    %18 = vector.extract_strided_slice %15 {offsets = [0, 32], sizes = [16, 1], strides = [1, 1]} : vector<16x33xf32> to vector<16x1xf32>
    %19 = arith.addf %18, %12 : vector<16x1xf32>
    %20 = vector.extract_strided_slice %10 {offsets = [0, 0], sizes = [1, 16], strides = [1, 1]} : vector<1x48xf32> to vector<1x16xf32>
    %21 = arith.addf %20, %13 : vector<1x16xf32>
    %c0_18 = arith.constant 0 : index
    %c0_19 = arith.constant 0 : index
    %c0_20 = arith.constant 0 : index
    %22 = vector.load %arg3[%c0_18, %c0_19, %c0_20] : memref<3x16x16xbf16, #tpu.memory_space<vmem>>, vector<1x16x16xbf16>
    %23 = vector.shape_cast %22 : vector<1x16x16xbf16> to vector<16x16xbf16>
    %24 = vector.broadcast %19 : vector<16x1xf32> to vector<16x16xf32>
    %25 = vector.broadcast %21 : vector<1x16xf32> to vector<16x16xf32>
    %26 = arith.addf %24, %25 : vector<16x16xf32>
    %cst_21 = arith.constant 0.000000e+00 : bf16
    %27 = vector.broadcast %cst_21 : bf16 to vector<16x16xbf16>
    %28 = arith.cmpf one, %23, %27 : vector<16x16xbf16>
    %cst_22 = arith.constant -1.111100e+04 : f32
    %29 = vector.broadcast %cst_22 : f32 to vector<16x16xf32>
    %30 = arith.select %28, %26, %29 : vector<16x16xi1>, vector<16x16xf32>
    %cst_23 = arith.constant dense<0xFF800000> : vector<16xf32>
    %31 = vector.multi_reduction <maximumf>, %30, %cst_23 [1] : vector<16x16xf32> to vector<16xf32>
    %32 = vector.shape_cast %31 : vector<16xf32> to vector<16x1xf32>
    %33 = vector.broadcast %32 : vector<16x1xf32> to vector<16x16xf32>
    %34 = arith.subf %30, %33 : vector<16x16xf32>
    %35 = math.exp %34 : vector<16x16xf32>
    %cst_24 = arith.constant dense<0.000000e+00> : vector<16xf32>
    %36 = vector.multi_reduction <add>, %35, %cst_24 [1] : vector<16x16xf32> to vector<16xf32>
    %37 = vector.shape_cast %36 : vector<16xf32> to vector<16x1xf32>
    %38 = tpu.reciprocal %37 {approx = true} : vector<16x1xf32> -> vector<16x1xf32>
    %39 = vector.broadcast %38 : vector<16x1xf32> to vector<16x16xf32>
    %40 = arith.mulf %35, %39 : vector<16x16xf32>
    %41 = arith.truncf %40 : vector<16x16xf32> to vector<16x16xbf16>
    %42 = arith.truncf %17 : vector<16x32xf32> to vector<16x32xbf16>
    %cst_25 = arith.constant dense<0.000000e+00> : vector<16x32xf32>
    %43 = tpu.matmul %41, %42, %cst_25 {dimension_numbers = #tpu.dot_dimension_numbers<[1], [0], [0], [1], [0, 0, 1, 1], [], []>} : vector<16x16xbf16>, vector<16x32xbf16>, vector<16x32xf32> -> vector<16x32xf32>
    %c3_i32 = arith.constant 3 : i32
    %44 = arith.muli %1, %c3_i32 : i32
    %c0_i32_26 = arith.constant 0 : i32
    %45 = arith.addi %44, %c0_i32_26 : i32
    %c6_i32 = arith.constant 6 : i32
    %46 = arith.cmpi slt, %45, %c6_i32 : i32
    %cst_27 = arith.constant 0.000000e+00 : f32
    %47 = vector.broadcast %cst_27 : f32 to vector<16x32xf32>
    %48 = arith.select %46, %43, %47 : vector<16x32xf32>
    %49 = arith.addf %14, %48 : vector<16x32xf32>
    %c16 = arith.constant 16 : index
    %c0_28 = arith.constant 0 : index
    %50 = vector.load %arg10[%c16, %c0_28] : memref<48x33xf32, #tpu.memory_space<vmem>>, vector<16x33xf32>
    %51 = vector.extract_strided_slice %50 {offsets = [0, 0], sizes = [16, 32], strides = [1, 1]} : vector<16x33xf32> to vector<16x32xf32>
    %52 = arith.addf %51, %11 : vector<16x32xf32>
    %53 = vector.extract_strided_slice %50 {offsets = [0, 32], sizes = [16, 1], strides = [1, 1]} : vector<16x33xf32> to vector<16x1xf32>
    %54 = arith.addf %53, %12 : vector<16x1xf32>
    %55 = vector.extract_strided_slice %10 {offsets = [0, 16], sizes = [1, 16], strides = [1, 1]} : vector<1x48xf32> to vector<1x16xf32>
    %56 = arith.addf %55, %13 : vector<1x16xf32>
    %c1 = arith.constant 1 : index
    %c0_29 = arith.constant 0 : index
    %c0_30 = arith.constant 0 : index
    %57 = vector.load %arg3[%c1, %c0_29, %c0_30] : memref<3x16x16xbf16, #tpu.memory_space<vmem>>, vector<1x16x16xbf16>
    %58 = vector.shape_cast %57 : vector<1x16x16xbf16> to vector<16x16xbf16>
    %59 = vector.broadcast %54 : vector<16x1xf32> to vector<16x16xf32>
    %60 = vector.broadcast %56 : vector<1x16xf32> to vector<16x16xf32>
    %61 = arith.addf %59, %60 : vector<16x16xf32>
    %cst_31 = arith.constant 0.000000e+00 : bf16
    %62 = vector.broadcast %cst_31 : bf16 to vector<16x16xbf16>
    %63 = arith.cmpf one, %58, %62 : vector<16x16xbf16>
    %cst_32 = arith.constant -1.111100e+04 : f32
    %64 = vector.broadcast %cst_32 : f32 to vector<16x16xf32>
    %65 = arith.select %63, %61, %64 : vector<16x16xi1>, vector<16x16xf32>
    %cst_33 = arith.constant dense<0xFF800000> : vector<16xf32>
    %66 = vector.multi_reduction <maximumf>, %65, %cst_33 [1] : vector<16x16xf32> to vector<16xf32>
    %67 = vector.shape_cast %66 : vector<16xf32> to vector<16x1xf32>
    %68 = vector.broadcast %67 : vector<16x1xf32> to vector<16x16xf32>
    %69 = arith.subf %65, %68 : vector<16x16xf32>
    %70 = math.exp %69 : vector<16x16xf32>
    %cst_34 = arith.constant dense<0.000000e+00> : vector<16xf32>
    %71 = vector.multi_reduction <add>, %70, %cst_34 [1] : vector<16x16xf32> to vector<16xf32>
    %72 = vector.shape_cast %71 : vector<16xf32> to vector<16x1xf32>
    %73 = tpu.reciprocal %72 {approx = true} : vector<16x1xf32> -> vector<16x1xf32>
    %74 = vector.broadcast %73 : vector<16x1xf32> to vector<16x16xf32>
    %75 = arith.mulf %70, %74 : vector<16x16xf32>
    %76 = arith.truncf %75 : vector<16x16xf32> to vector<16x16xbf16>
    %77 = arith.truncf %52 : vector<16x32xf32> to vector<16x32xbf16>
    %cst_35 = arith.constant dense<0.000000e+00> : vector<16x32xf32>
    %78 = tpu.matmul %76, %77, %cst_35 {dimension_numbers = #tpu.dot_dimension_numbers<[1], [0], [0], [1], [0, 0, 1, 1], [], []>} : vector<16x16xbf16>, vector<16x32xbf16>, vector<16x32xf32> -> vector<16x32xf32>
    %c3_i32_36 = arith.constant 3 : i32
    %79 = arith.muli %1, %c3_i32_36 : i32
    %c1_i32_37 = arith.constant 1 : i32
    %80 = arith.addi %79, %c1_i32_37 : i32
    %c6_i32_38 = arith.constant 6 : i32
    %81 = arith.cmpi slt, %80, %c6_i32_38 : i32
    %cst_39 = arith.constant 0.000000e+00 : f32
    %82 = vector.broadcast %cst_39 : f32 to vector<16x32xf32>
    %83 = arith.select %81, %78, %82 : vector<16x32xf32>
    %84 = arith.addf %49, %83 : vector<16x32xf32>
    %c32 = arith.constant 32 : index
    %c0_40 = arith.constant 0 : index
    %85 = vector.load %arg10[%c32, %c0_40] : memref<48x33xf32, #tpu.memory_space<vmem>>, vector<16x33xf32>
    %86 = vector.extract_strided_slice %85 {offsets = [0, 0], sizes = [16, 32], strides = [1, 1]} : vector<16x33xf32> to vector<16x32xf32>
    %87 = arith.addf %86, %11 : vector<16x32xf32>
    %88 = vector.extract_strided_slice %85 {offsets = [0, 32], sizes = [16, 1], strides = [1, 1]} : vector<16x33xf32> to vector<16x1xf32>
    %89 = arith.addf %88, %12 : vector<16x1xf32>
    %90 = vector.extract_strided_slice %10 {offsets = [0, 32], sizes = [1, 16], strides = [1, 1]} : vector<1x48xf32> to vector<1x16xf32>
    %91 = arith.addf %90, %13 : vector<1x16xf32>
    %c2 = arith.constant 2 : index
    %c0_41 = arith.constant 0 : index
    %c0_42 = arith.constant 0 : index
    %92 = vector.load %arg3[%c2, %c0_41, %c0_42] : memref<3x16x16xbf16, #tpu.memory_space<vmem>>, vector<1x16x16xbf16>
    %93 = vector.shape_cast %92 : vector<1x16x16xbf16> to vector<16x16xbf16>
    %94 = vector.broadcast %89 : vector<16x1xf32> to vector<16x16xf32>
    %95 = vector.broadcast %91 : vector<1x16xf32> to vector<16x16xf32>
    %96 = arith.addf %94, %95 : vector<16x16xf32>
    %cst_43 = arith.constant 0.000000e+00 : bf16
    %97 = vector.broadcast %cst_43 : bf16 to vector<16x16xbf16>
    %98 = arith.cmpf one, %93, %97 : vector<16x16xbf16>
    %cst_44 = arith.constant -1.111100e+04 : f32
    %99 = vector.broadcast %cst_44 : f32 to vector<16x16xf32>
    %100 = arith.select %98, %96, %99 : vector<16x16xi1>, vector<16x16xf32>
    %cst_45 = arith.constant dense<0xFF800000> : vector<16xf32>
    %101 = vector.multi_reduction <maximumf>, %100, %cst_45 [1] : vector<16x16xf32> to vector<16xf32>
    %102 = vector.shape_cast %101 : vector<16xf32> to vector<16x1xf32>
    %103 = vector.broadcast %102 : vector<16x1xf32> to vector<16x16xf32>
    %104 = arith.subf %100, %103 : vector<16x16xf32>
    %105 = math.exp %104 : vector<16x16xf32>
    %cst_46 = arith.constant dense<0.000000e+00> : vector<16xf32>
    %106 = vector.multi_reduction <add>, %105, %cst_46 [1] : vector<16x16xf32> to vector<16xf32>
    %107 = vector.shape_cast %106 : vector<16xf32> to vector<16x1xf32>
    %108 = tpu.reciprocal %107 {approx = true} : vector<16x1xf32> -> vector<16x1xf32>
    %109 = vector.broadcast %108 : vector<16x1xf32> to vector<16x16xf32>
    %110 = arith.mulf %105, %109 : vector<16x16xf32>
    %111 = arith.truncf %110 : vector<16x16xf32> to vector<16x16xbf16>
    %112 = arith.truncf %87 : vector<16x32xf32> to vector<16x32xbf16>
    %cst_47 = arith.constant dense<0.000000e+00> : vector<16x32xf32>
    %113 = tpu.matmul %111, %112, %cst_47 {dimension_numbers = #tpu.dot_dimension_numbers<[1], [0], [0], [1], [0, 0, 1, 1], [], []>} : vector<16x16xbf16>, vector<16x32xbf16>, vector<16x32xf32> -> vector<16x32xf32>
    %c3_i32_48 = arith.constant 3 : i32
    %114 = arith.muli %1, %c3_i32_48 : i32
    %c2_i32 = arith.constant 2 : i32
    %115 = arith.addi %114, %c2_i32 : i32
    %c6_i32_49 = arith.constant 6 : i32
    %116 = arith.cmpi slt, %115, %c6_i32_49 : i32
    %cst_50 = arith.constant 0.000000e+00 : f32
    %117 = vector.broadcast %cst_50 : f32 to vector<16x32xf32>
    %118 = arith.select %116, %113, %117 : vector<16x32xf32>
    %119 = arith.addf %84, %118 : vector<16x32xf32>
    %c0_51 = arith.constant 0 : index
    %c0_52 = arith.constant 0 : index
    %c0_53 = arith.constant 0 : index
    %120 = vector.load %arg9[%c0_51, %c0_52, %c0_53] : memref<1x16x32xf32, #tpu.memory_space<vmem>>, vector<1x16x32xf32>
    %121 = vector.shape_cast %120 : vector<1x16x32xf32> to vector<16x32xf32>
    %122 = arith.addf %121, %119 : vector<16x32xf32>
    %c0_54 = arith.constant 0 : index
    %c0_55 = arith.constant 0 : index
    %c0_56 = arith.constant 0 : index
    %123 = vector.load %arg9[%c0_54, %c0_55, %c0_56] : memref<1x16x32xf32, #tpu.memory_space<vmem>>, vector<1x16x32xf32>
    %124 = vector.shape_cast %123 : vector<1x16x32xf32> to vector<16x32xf32>
    %125 = vector.shape_cast %122 : vector<16x32xf32> to vector<1x16x32xf32>
    tpu.vector_store %arg9[%c0_54, %c0_55, %c0_56], %125 {strides = array<i32>} : memref<1x16x32xf32, #tpu.memory_space<vmem>>, vector<1x16x32xf32>,
    return
  }
  func.func @transform_0(%arg0: i32, %arg1: i32) -> (i32, i32) {
    %c1_i32 = arith.constant 1 : i32
    %0 = arith.muli %arg0, %c1_i32 : i32
    %1 = arith.addi %0, %arg1 : i32
    %c1_i32_0 = arith.constant 1 : i32
    %2 = arith.minsi %1, %c1_i32_0 : i32
    %c0_i32 = arith.constant 0 : i32
    %c0_i32_1 = arith.constant 0 : i32
    return %2, %c0_i32 : i32, i32
  }
  func.func @transform_1(%arg0: i32, %arg1: i32) -> (i32, i32, i32) {
    %c1_i32 = arith.constant 1 : i32
    %0 = arith.muli %arg0, %c1_i32 : i32
    %1 = arith.addi %0, %arg1 : i32
    %c1_i32_0 = arith.constant 1 : i32
    %2 = arith.minsi %1, %c1_i32_0 : i32
    %c0_i32 = arith.constant 0 : i32
    %c0_i32_1 = arith.constant 0 : i32
    %c0_i32_2 = arith.constant 0 : i32
    return %2, %c0_i32, %c0_i32_1 : i32, i32, i32
  }
  func.func @transform_2(%arg0: i32, %arg1: i32) -> (i32, i32) {
    %c0_i32 = arith.constant 0 : i32
    %c0_i32_0 = arith.constant 0 : i32
    %c0_i32_1 = arith.constant 0 : i32
    return %c0_i32, %c0_i32_0 : i32, i32
  }
  func.func @transform_3(%arg0: i32, %arg1: i32) -> (i32, i32) {
    %c0_i32 = arith.constant 0 : i32
    %c0_i32_0 = arith.constant 0 : i32
    %c0_i32_1 = arith.constant 0 : i32
    return %c0_i32, %c0_i32_0 : i32, i32
  }
  func.func @transform_4(%arg0: i32, %arg1: i32) -> (i32, i32) {
    %c0_i32 = arith.constant 0 : i32
    %c0_i32_0 = arith.constant 0 : i32
    %c0_i32_1 = arith.constant 0 : i32
    return %c0_i32, %c0_i32_0 : i32, i32
  }
  func.func @transform_5(%arg0: i32, %arg1: i32) -> (i32, i32) {
    %c0_i32 = arith.constant 0 : i32
    %c0_i32_0 = arith.constant 0 : i32
    %c0_i32_1 = arith.constant 0 : i32
    return %c0_i32, %c0_i32_0 : i32, i32
  }
  func.func @transform_6(%arg0: i32, %arg1: i32) -> (i32, i32) {
    %c0_i32 = arith.constant 0 : i32
    %c0_i32_0 = arith.constant 0 : i32
    %c0_i32_1 = arith.constant 0 : i32
    return %c0_i32, %c0_i32_0 : i32, i32
  }
  func.func @transform_7(%arg0: i32, %arg1: i32) -> (i32, i32, i32) {
    %c0_i32 = arith.constant 0 : i32
    %c0_i32_0 = arith.constant 0 : i32
    %c0_i32_1 = arith.constant 0 : i32
    return %arg0, %c0_i32, %c0_i32_0 : i32, i32, i32
  }
}

</mosaic_0001>

<bundles_post_ra>
// kernel: tpu_custom_call.1
= control target key start
LH: loop header
LB: loop body
LE: loop exit
PB: predicated region body
PF: predicated region fallthrough
CT: control target
= control target key end

     0   :  { %12 = vsyncpa [#allocation4], 0  ;;  %s1369_s0 = inlined_call_operand.vmem [shape: bf16[96,8], index: 0, kind: input, shape index: {}]   ;;  %s1370_s1 = inlined_call_operand.vmem [shape: bf16[6,16,16], index: 1, kind: input, shape index: {}]   ;;  %s1371_s2 = inlined_call_operand.hbm [shape: bf16[8,33], index: 2, kind: input, shape index: {}]   ;;  %s1372_s3 = inlined_call_operand.vmem [shape: bf16[1,8], index: 3, kind: input, shape index: {}]   ;;  %s1373_s4 = inlined_call_operand.vmem [shape: f32[16,32], index: 4, kind: input, shape index: {}]   ;;  %s1374_s5 = inlined_call_operand.vmem [shape: f32[16,1], index: 5, kind: input, shape index: {}]   ;;  %s1375_s6 = inlined_call_operand.vmem [shape: f32[1,16], index: 6, kind: input, shape index: {}]   ;;  %s1376_s7 = inlined_call_operand.hbm [shape: f32[2,16,32], index: 7, kind: output, shape index: {}]  }
   0x1   :  { %13 = vsyncpa [#allocation5], 0 }
   0x2   :  { %15 = vsyncpa [#allocation5 + $0x1], 0  ;;  %s1180_s24 = smov 0   ;;  %s1182_s25 = smov 0  }
   0x3   :  { %s1184_s26 = smov 0   ;;  %s1186_s27 = smov 0  }
   0x4   :  { %s1188_s28 = smov 0   ;;  %s1190_s29 = smov 0  }
   0x5 LB: > { %s857_s30 = sadd.s32 4294967295, %s1129_s29   ;;  %s858_s8 = sadd.s32 4294967294, %s1129_s29   ;;  %s1129_s29 = sphi %s1190_s29, %s21_s29   ;;  %s1125_s28 = sphi %s1188_s28, %s1385_s28   ;;  %s1121_s27 = sphi %s1186_s27, %s1384_s27   ;;  %s1117_s26 = sphi %s1184_s26, %s1383_s26   ;;  %s1113_s25 = sphi %s1182_s25, %s1382_s25   ;;  %s1109_s24 = sphi %s1180_s24, %s1381_s24  }
   0x6   : > { %s33_s9 = sadd.s32 1, %s1125_s28  ;;  %s209_s10 = sadd.s32 1, %s1117_s26 }
   0x7   : > { %p35_p0 = scmp.ge.s32.totalorder %s33_s9, 2  ;;  %p219_p1 = scmp.ne.s32.totalorder %s1117_s26, %s1113_s25 }
   0x8   : > { %p220_p2 = scmp.eq.s32.totalorder %s857_s30, 1  ;;  %p225_p3 = scmp.ne.s32.totalorder %s1113_s25, %s1109_s24 }
   0x9   : > { %s1387_s9 = smov (%p35_p0, %s33_s9), 0  ;;  %p226_p5 = scmp.eq.s32.totalorder %s858_s8, 1 }
   0xa   : > { %p1220_p4 = por %p220_p2, %p219_p1  ;;  %s206_s12 = ssub.s32 %s1125_s28, %s1387_s9 }
   0xb   : > { %p859_p6 = scmp.ge.s32.totalorder %s1129_s29, 1  ;;  %p207_p7 = scmp.eq.s32.totalorder %s206_s12, 0 }
   0xc   : > { %p1227_p8 = por %p226_p5, %p225_p3  ;;  %p233_p9 = scmp.lt.s32.totalorder %s1129_s29, 3 }
   0xd   : > { %s1233_s14 = scalar_select %p207_p7, %s1117_s26, %s209_s10  }
   0xe   : > { %p234_p10 = pnand %p859_p6, %p233_p9  ;;  %p929_p11 = scmp.eq.s32.totalorder %s857_s30, 0 }
   0xf   : > { %s245_s17 = sshll.u32 %s1371_s2, 4  ;;  %s1131_s18 = smov [#allocation3]   ;;  %s246_s17 = int_to_ptr.hbm [resolvable:$true] %s245_s17 }
  0x10   : > { %p921_p12 = pneg %p234_p10  ;;  %s247_s19 = sshll.u32 %s1131_s18, 4  ;;  %s248_s19 = int_to_ptr.vmem [resolvable:$true] %s247_s19 }
  0x11   : > { %303 = sbr.rel (%p234_p10) target bundleno = 841 (0x349), region = 48 }
  0x12   : > { %p922_p13 = pnand %p929_p11, %p921_p12 }
  0x14   : > { %924 = dma.hbm_to_vmem [thread:$0]  (!%p922_p13), %s246_s17, 64, %s248_s19, [#allocation4]  }
  0x16   : > { %1100 = dma.done.wait (%p929_p11), [#allocation4], 64  }
  0x17   : > { %1102 = vsyncadd (%p929_p11), [#allocation4], 4294967232  ;;  %p349_p0 = scmp.lt.s32.totalorder %s1121_s27, 1  ;;  %vm414_vm0 = vcmask 1043456   ;;  %v388_v0 = vld [vmem:[#allocation3] sm:$0xf] }
  0x18   : > { %v468_v1 = vld [vmem:[%s1374_s5] sm:$0xff]  ;;  %v416_v2 = vsel %vm414_vm0, %v388_v0, 0  ;;  %s1132_s30 = smov 32   ;;  %vm404_vm1 = vcmask 64512   ;;  %v469_v5 = vld [vmem:[%s1374_s5 + $0x8] sm:$0xff]  ;;  %v1134_v12 = vmov 32  }
  0x19   : > { %s1240_s20 = scalar_select %p349_p0, %s1121_s27, 1  ;;  %477 = vrot.lane.b32.xlu0 %v468_v1, %s1132_s30  ;;  %425 = vmatpush.bf16.msra.mxu0 %v416_v2  ;;  %v992_v7 = vld [vmem:[%s1375_s6] ss:$0 sm:$0xff]  ;;  %vm442_vm2 = vcmask 269312   ;;  %v467_v16 = vld [vmem:[%s1373_s4 + $0x8] sm:$0xff]  ;;  %vm507_vm4 = vcmask 130048  }
  0x1a   : > { %v449_v11 = vld [vmem:[%s1372_s3] sm:$0x1]  ;;  %989 = vset.pattern.permute.xlu2 %v1134_v12  ;;  %990 = vset.pattern.permute.xlu0 %v1134_v12  ;;  %vm379_vm10 = vcmask 261120   ;;  %s549_s12 = smul.u32 3, %s1121_s27 }
  0x1b   : > { %s351_s21 = smul.u32 6, %s1240_s20  ;;  %991 = vset.pattern.permute.xlu1 %v1134_v12  ;;  %v466_v15 = vld [vmem:[%s1373_s4] sm:$0xff] }
  0x1c   : > { %s363_s16 = smul.u32 3, %s1240_s20  ;;  %v470_v54 = vld [vmem:[%s1375_s6] sm:$0x1]  ;;  %s1136_s20 = smov 96  }
  0x1d   : > { %p352_p1 = scmp.lt.s32.totalorder %s351_s21, 11  ;;  %p550_p5 = scmp.lt.s32.totalorder %s549_s12, 6 }
  0x1e   : > { %p364_p2 = scmp.lt.s32.totalorder %s363_s16, 5 }
  0x1f   : > { %s1389_s21 = smov (!%p352_p1, %s351_s21), 11 }
  0x20   : > { %s865_s8 = sshll.u32 %s1389_s21, 2  ;;  %s1133_s21 = smov 16  }
  0x21   : > { %s355_s15 = scalar_lea.vmem %s1369_s0, %s865_s8  ;;  %479 = vrot.lane.b32.xlu0 %v469_v5, %s1132_s30  ;;  %566 = vrot.lane.b32.xlu1 %v992_v7, %s1133_s21  ;;  %s1391_s16 = smov (!%p364_p2, %s363_s16), 5 }
  0x22   : > { %v897_v3 = vld [vmem:[%s355_s15] sm:$0xff]  ;;  %v899_v4 = vld [vmem:[%s355_s15 + $0x10] sm:$0xff]  ;;  %v898_v8 = vld [vmem:[%s355_s15 + $0x8] sm:$0xff]  ;;  %s1135_s15 = smov 112   ;;  %s896_s17 = sshll.u32 %s1391_s16, 3 }
  0x23   : > { %880 = vmatmul.msk.bf16.vlgmr.msra.gmra.mxu0 %vm404_vm1, %v897_v3  ;;  %v412_v6 = vsel %vm404_vm1, %v899_v4, 0  ;;  %v409_v9 = vsel %vm404_vm1, %v898_v8, 0  ;;  %v406_v10 = vsel %vm404_vm1, %v897_v3, 0  ;;  %s1284_s23 = scalar_lea.vmem %s1370_s1, %s896_s17  ;;  %s731_s16 = sadd.s32 2, %s549_s12 }
  0x24   : > { %458 = vmatpush.bf16.xpose.msra.mxu1 %v412_v6  ;;  %v902_v58 = vld [vmem:[%s1284_s23] sm:$0xff]   ;;  %p732_p6 = scmp.lt.s32.totalorder %s731_s16, 6  ;;  %s900_s21 = sshll.u32 %s1121_s27, 4 }
  0x25   : > { %v903_v63 = vunpack.c.l.bf16 %v902_v58  ;;  %v904_v6 = vunpack.c.h.bf16 %v902_v58  ;;  %s551_s18 = scalar_select %p550_p5, 1, 0 }
  0x26   : > { %s733_s19 = scalar_select %p732_p6, 1, 0 }
  0x27   : > { %vm503_vm3 = vcmp.ne.f32.partialorder %v903_v63, 0.0  ;;  %vm504_vm5 = vcmp.ne.f32.partialorder %v904_v6, 0.0 }
  0x29   : > { %656 = vrot.lane.b32.xlu1 %v992_v7, %s1132_s30  ;;  %s345_s30 = sand.u32 1, %s1113_s25  }
  0x2a   : > { %s864_s8 = sshll.u32 %s345_s30, 4  ;;  %s748_s27 = scalar_lea.sflag [#allocation5], %s345_s30 }
  0x2b   : > { %s1307_s10 = scalar_lea.vmem [#allocation6], %s864_s8 }
  0x2c   : > { %459 = vmatpush.bf16.xpose.msra.mxu1 %v409_v9  ;;  %s760_s8 = sshll.u32 %s1307_s10, 4  ;;  %s761_s8 = int_to_ptr.vmem [resolvable:$true] %s760_s8 }
  0x33   : > { %881 = vmatmul.msk.bf16.gmra.mxu0 %vm404_vm1, %v898_v8 }
  0x34   : > { %460 = vmatpush.bf16.xpose.msra.mxu1 %v406_v10  ;;  %v913_v10 = vld [vmem:[%s1284_s23 + $0x8] sm:$0xff]  }
  0x3b   : > { %883 = vmatmul.msk.bf16.vlgmr.msra.gmra.mxu1 %vm404_vm1, %v449_v11  ;;  %v907_v11 = vunpack.c.l.bf16 %v913_v10 }
  0x3d   : > { %vm588_vm6 = vcmp.ne.f32.partialorder %v907_v11, 0.0 }
  0x43   : > { %882 = vmatmul.msk.bf16.gmra.mxu0 %vm404_vm1, %v899_v4 }
  0x8b   : > { %v478_v23 = vpop.permute.xlu0 %477 }
  0x93   : > { %v480_v28 = vpop.permute.xlu0 %479  ;;  %v567_v46 = vpop.permute.xlu1 %566 }
  0x9b   : > { %v657_v53 = vpop.permute.xlu1 %656 }
  0xa0   : > { %v427_v13 = vpop.f32.mrf.mxu0 }
  0xa1   : > { %443 = vst.msk [vmem:[#allocation2] sm:$0xff] %vm442_vm2, %v427_v13 }
  0xa8   : > { %v429_v14 = vpop.f32.mrf.mxu0  ;;  %v471_v17 = vld [vmem:[#allocation2] sm:$0xff] }
  0xa9   : > { %444 = vst.msk [vmem:[#allocation2 + $0x8] sm:$0xff] %vm442_vm2, %v429_v14  ;;  %v473_v20 = vadd.f32 %v471_v17, %v466_v15  ;;  %v483_v38 = vadd.f32 %v478_v23, %v471_v17 }
  0xb0   : > { %v432_v18 = vpop.f32.mrf.mxu0  ;;  %v472_v19 = vld [vmem:[#allocation2 + $0x8] sm:$0xff] }
  0xb1   : > { %445 = vst.msk [vmem:[#allocation2 + $0x10] sm:$0xff] %vm442_vm2, %v432_v18  ;;  %v474_v21 = vadd.f32 %v472_v19, %v467_v16  ;;  %v484_v45 = vadd.f32 %v480_v28, %v472_v19  ;;  %v914_v19 = vld [vmem:[%s1284_s23 + $0x10] sm:$0xff]  }
  0xb3   : > { %v531_v22 = vpack.c.bf16 %v474_v21, %v473_v20  ;;  %v912_v20 = vunpack.c.h.bf16 %v914_v19 }
  0xb5   : > { %542 = vmatpush.bf16.msra.mxu2 %v531_v22  ;;  %vm679_vm8 = vcmp.ne.f32.partialorder %v912_v20, 0.0  ;;  %v552_v20 = vstv %s551_s18 }
  0xb6   : > { %vm1314_vm12 = vcmp.eq.s32.totalorder %v552_v20, 1 }
  0xb8   : > { %v434_v24 = vpop.f32.mrf.mxu0  ;;  %v558_v25 = vld [vmem:[#allocation2 + $0x10] sm:$0xff]  ;;  %v462_v27 = vpop.f32.mrf.mxu1 }
  0xb9   : > { %446 = vst.msk [vmem:[#allocation2 + $0x18] sm:$0xff] %vm442_vm2, %v434_v24  ;;  %v562_v26 = vadd.f32 %v558_v25, %v478_v23  ;;  %v560_v32 = vadd.f32 %v558_v25, %v466_v15  ;;  %v569_v47 = vadd.f32 %v567_v46, %v462_v27  ;;  %v659_v55 = vadd.f32 %v657_v53, %v462_v27 }
  0xba   : > { %v485_v56 = vadd.f32 %v470_v54, %v462_v27  ;;  %v911_v24 = vunpack.c.l.bf16 %v914_v19 }
  0xbb   : > { %575 = vperm.xlu2 %989, %v562_v26   ;;  %v583_v48 = vperm.slane %v569_v47, 0  ;;  %v673_v57 = vperm.slane %v659_v55, 0 }
  0xbc   : > { %v498_v60 = vperm.slane %v485_v56, 0  ;;  %vm678_vm9 = vcmp.ne.f32.partialorder %v911_v24, 0.0 }
  0xc0   : > { %v437_v29 = vpop.f32.mrf.mxu0  ;;  %v559_v30 = vld [vmem:[#allocation2 + $0x18] sm:$0xff]  ;;  %v464_v35 = vpop.f32.mrf.mxu1 }
  0xc1   : > { %447 = vst.msk [vmem:[#allocation2 + $0x20] sm:$0xff] %vm442_vm2, %v437_v29  ;;  %v563_v31 = vadd.f32 %v559_v30, %v480_v28  ;;  %v561_v33 = vadd.f32 %v559_v30, %v467_v16 }
  0xc3   : > { %580 = vperm.xlu2 %989, %v563_v31   ;;  %v623_v34 = vpack.c.bf16 %v561_v33, %v560_v32 }
  0xc5   : > { %634 = vmatpush.bf16.msra.mxu3 %v623_v34 }
  0xc8   : > { %v439_v36 = vpop.f32.mrf.mxu0  ;;  %v650_v37 = vld [vmem:[#allocation2 + $0x20] sm:$0xff] }
  0xc9   : > { %448 = vst.msk [vmem:[#allocation2 + $0x28] sm:$0xff] %vm442_vm2, %v439_v36  ;;  %v654_v39 = vadd.f32 %v650_v37, %v478_v23  ;;  %v652_v42 = vadd.f32 %v650_v37, %v466_v15  ;;  %v908_v15 = vunpack.c.h.bf16 %v913_v10 }
  0xcb   : > { %490 = vperm.xlu2 %989, %v483_v38   ;;  %665 = vperm.xlu0 %990, %v654_v39   ;;  %vm589_vm7 = vcmp.ne.f32.partialorder %v908_v15, 0.0  ;;  %v1137_v15 = vmov 0.0  }
  0xcc   : > { %380 = vst.msk [vmem:[%s1307_s10] sm:$0xff] %vm379_vm10, %v1137_v15 }
  0xcd   : > { %381 = vst.msk [vmem:[%s1307_s10 + $0x8] sm:$0xff] %vm379_vm10, %v1137_v15 }
  0xd0   : > { %v651_v40 = vld [vmem:[#allocation2 + $0x28] sm:$0xff] }
  0xd1   : > { %v655_v41 = vadd.f32 %v651_v40, %v480_v28  ;;  %v653_v43 = vadd.f32 %v651_v40, %v467_v16 }
  0xd3   : > { %670 = vperm.xlu1 %991, %v655_v41   ;;  %v713_v44 = vpack.c.bf16 %v653_v43, %v652_v42 }
  0xd5   : > { %724 = vmatpush.bf16.msrb.mxu2 %v713_v44 }
  0xdb   : > { %495 = vperm.xlu1 %991, %v484_v45  }
 0x115   : > { %v576_v49 = vpop.permute.xlu2 %575 }
 0x116   : > { %v584_v50 = vadd.f32 %v583_v48, %v576_v49 }
 0x118   : > { %592 = vrot.lane.b32.xlu2 %v584_v50, %s1135_s15 }
 0x11d   : > { %v581_v51 = vpop.permute.xlu2 %580 }
 0x11e   : > { %v585_v52 = vadd.f32 %v583_v48, %v581_v51 }
 0x120   : > { %594 = vrot.lane.b32.xlu0 %v585_v52, %s1135_s15  ;;  %s641_s15 = sadd.s32 1, %s549_s12 }
 0x121   : > { %p642_p3 = scmp.lt.s32.totalorder %s641_s15, 6 }
 0x123   : > { %s643_s17 = scalar_select %p642_p3, 1, 0 }
 0x125   : > { %v491_v62 = vpop.permute.xlu2 %490 }
 0x126   : > { %v499_v0 = vadd.f32 %v498_v60, %v491_v62 }
 0x128   : > { %v505_v3 = vsel %vm503_vm3, %v499_v0, -11111.0 }
 0x129   : > { %v508_v4 = vsel %vm507_vm4, %v505_v3, -inf }
 0x13d   : > { %v666_v59 = vpop.permute.xlu0 %665 }
 0x13e   : > { %v674_v61 = vadd.f32 %v673_v57, %v666_v59 }
 0x140   : > { %682 = vrot.lane.b32.xlu1 %v674_v61, %s1136_s20 }
 0x145   : > { %v671_v1 = vpop.permute.xlu1 %670 }
 0x146   : > { %v675_v2 = vadd.f32 %v673_v57, %v671_v1 }
 0x148   : > { %684 = vrot.lane.b32.xlu2 %v675_v2, %s1136_s20  ;;  %s759_s20 = scalar_lea.hbm %s1376_s7, %s900_s21 }
 0x149   : > { %s762_s12 = sshll.u32 %s759_s20, 4  ;;  %s763_s12 = int_to_ptr.hbm [resolvable:$true] %s762_s12 }
 0x14a   : > { %509 = vmax.xlane.f32.xlu0 %v508_v4  ;;  %s1061_s15 = sshra.s32 %s763_s12, 4  ;;  %s1062_s15 = int_to_ptr.hbm [resolvable:$true] %s1061_s15 }
 0x14b   : > { %s1063_s16 = scalar_lea.hbm %s1062_s15, 16  ;;  %p1068_p11 = scmp.lt.s32.totalorder %s1062_s15, %s1376_s7 }
 0x14c   : > { %p1064_p7 = scmp.ne.s32.totalorder %s1062_s15, %s1063_s16 }
 0x14d   : > { %v496_v5 = vpop.permute.xlu1 %495 }
 0x14e   : > { %v500_v7 = vadd.f32 %v498_v60, %v496_v5  ;;  %p1065_p9 = pnand %p1064_p7, %p1220_p4 }
 0x150   : > { %v506_v8 = vsel %vm504_vm5, %v500_v7, -11111.0  ;;  %p1066_p10 = pneg %p1065_p9 }
 0x151   : > { %v511_v9 = vsel %vm507_vm4, %v506_v8, -inf }
 0x16a   : > { %512 = vmax.xlane.f32.xlu1 %v511_v9 }
 0x172   : > { %v593_v12 = vpop.permute.xlu2 %592 }
 0x173   : > { %v598_v13 = vsel %vm588_vm6, %v593_v12, -11111.0 }
 0x174   : > { %v600_v14 = vsel %vm507_vm4, %v598_v13, -inf }
 0x175   : > { %601 = vmax.xlane.f32.xlu2 %v600_v14 }
 0x192   : > { %v595_v16 = vpop.permute.xlu0 %594 }
 0x193   : > { %v599_v17 = vsel %vm589_vm7, %v595_v16, -11111.0 }
 0x194   : > { %v603_v18 = vsel %vm507_vm4, %v599_v17, -inf }
 0x195   : > { %604 = vmax.xlane.f32.xlu2 %v603_v18 }
 0x1a2   : > { %v685_v21 = vpop.permute.xlu2 %684 }
 0x1a3   : > { %v689_v22 = vsel %vm679_vm8, %v685_v21, -11111.0  ;;  %v734_v21 = vstv %s733_s19  ;;  %s1067_s19 = scalar_lea.hbm %s1376_s7, 32 }
 0x1a4   : > { %v693_v23 = vsel %vm507_vm4, %v689_v22, -inf  ;;  %vm735_vm13 = vcmp.eq.s32.totalorder %v734_v21, 1  ;;  %p1069_p12 = scmp.lt.s32.totalorder %s1067_s19, %s1063_s16 }
 0x1a5   : > { %694 = vmax.xlane.f32.xlu1 %v693_v23 }
 0x1a6   : > { %p1070_p13 = por %p1069_p12, %p1068_p11 }
 0x1a8   : > { %p1071_p0 = pnand %p1070_p13, %p1066_p10 }
 0x1b2   : > { %v683_v25 = vpop.permute.xlu1 %682 }
 0x1b3   : > { %v688_v26 = vsel %vm678_vm9, %v683_v25, -11111.0 }
 0x1b4   : > { %v690_v27 = vsel %vm507_vm4, %v688_v26, -inf }
 0x1b5   : > { %691 = vmax.xlane.f32.xlu0 %v690_v27 }
 0x1bd   : > { %v510_v28 = vpop.xlane.xlu0 %509 }
 0x1be   : > { %v514_v29 = vsub.f32 %v505_v3, %v510_v28  ;;  %v740_v28 = vld [vmem:[%s1307_s10] sm:$0xff] }
 0x1c0   : > { %v516_v30 = vmul.f32 1.442695, %v514_v29 }
 0x1c2   : > { %993 = vpow2.f32 %v516_v30 }
 0x1c8   : > { %v994_v31 = vpop.eup %993 }
 0x1c9   : > { %v520_v32 = vsel %vm507_vm4, %v994_v31, 0.0 }
 0x1ca   : > { %521 = vadd.xlane.f32.xlu2 %v520_v32 }
 0x1dd   : > { %v513_v33 = vpop.xlane.xlu1 %512 }
 0x1de   : > { %v515_v34 = vsub.f32 %v506_v8, %v513_v33 }
 0x1e0   : > { %v518_v35 = vmul.f32 1.442695, %v515_v34 }
 0x1e2   : > { %995 = vpow2.f32 %v518_v35 }
 0x1e8   : > { %v996_v36 = vpop.eup %995  ;;  %v602_v37 = vpop.xlane.xlu2 %601 }
 0x1e9   : > { %v606_v38 = vsub.f32 %v598_v13, %v602_v37  ;;  %v523_v39 = vsel %vm507_vm4, %v996_v36, 0.0  ;;  %v741_v37 = vld [vmem:[%s1307_s10 + $0x8] sm:$0xff] }
 0x1ea   : > { %524 = vadd.xlane.f32.xlu0 %v523_v39 }
 0x1eb   : > { %v608_v40 = vmul.f32 1.442695, %v606_v38 }
 0x1ed   : > { %997 = vpow2.f32 %v608_v40 }
 0x1f3   : > { %v998_v41 = vpop.eup %997 }
 0x1f4   : > { %v612_v42 = vsel %vm507_vm4, %v998_v41, 0.0 }
 0x1f5   : > { %613 = vadd.xlane.f32.xlu1 %v612_v42 }
 0x208   : > { %v605_v43 = vpop.xlane.xlu2 %604 }
 0x209   : > { %v607_v44 = vsub.f32 %v599_v17, %v605_v43  ;;  %v644_v17 = vstv %s643_s17 }
 0x20a   : > { %vm645_vm11 = vcmp.eq.s32.totalorder %v644_v17, 1 }
 0x20b   : > { %v610_v45 = vmul.f32 1.442695, %v607_v44 }
 0x20d   : > { %999 = vpow2.f32 %v610_v45 }
 0x213   : > { %v1000_v46 = vpop.eup %999 }
 0x214   : > { %v615_v47 = vsel %vm507_vm4, %v1000_v46, 0.0 }
 0x215   : > { %616 = vadd.xlane.f32.xlu2 %v615_v47 }
 0x218   : > { %v695_v48 = vpop.xlane.xlu1 %694 }
 0x219   : > { %v697_v49 = vsub.f32 %v689_v22, %v695_v48 }
 0x21b   : > { %v700_v50 = vmul.f32 1.442695, %v697_v49 }
 0x21d   : > { %1001 = vpow2.f32 %v700_v50 }
 0x223   : > { %v1002_v51 = vpop.eup %1001 }
 0x224   : > { %v705_v52 = vsel %vm507_vm4, %v1002_v51, 0.0 }
 0x225   : > { %706 = vadd.xlane.f32.xlu1 %v705_v52 }
 0x228   : > { %v692_v53 = vpop.xlane.xlu0 %691 }
 0x229   : > { %v696_v54 = vsub.f32 %v688_v26, %v692_v53 }
 0x22b   : > { %v698_v55 = vmul.f32 1.442695, %v696_v54 }
 0x22d   : > { %1003 = vpow2.f32 %v698_v55 }
 0x233   : > { %v1004_v56 = vpop.eup %1003 }
 0x234   : > { %v702_v57 = vsel %vm507_vm4, %v1004_v56, 0.0 }
 0x235   : > { %703 = vadd.xlane.f32.xlu0 %v702_v57 }
 0x23d   : > { %v522_v58 = vpop.xlane.xlu2 %521 }
 0x23e   : > { %1005 = vrcp.f32 %v522_v58 }
 0x244   : > { %v1006_v60 = vpop.eup %1005 }
 0x245   : > { %v528_v62 = vmul.f32 %v1006_v60, %v994_v31 }
 0x25d   : > { %v525_v59 = vpop.xlane.xlu0 %524 }
 0x25e   : > { %1007 = vrcp.f32 %v525_v59 }
 0x264   : > { %v1008_v61 = vpop.eup %1007 }
 0x265   : > { %v529_v63 = vmul.f32 %v1008_v61, %v996_v36 }
 0x267   : > { %v530_v0 = vpack.c.bf16 %v529_v63, %v528_v62 }
 0x268   : > { %v614_v1 = vpop.xlane.xlu1 %613 }
 0x269   : > { %884 = vmatmul.msk.bf16.vlgmr.msra.gmra.mxu2 %vm507_vm4, %v530_v0  ;;  %1009 = vrcp.f32 %v614_v1 }
 0x26f   : > { %v1010_v3 = vpop.eup %1009 }
 0x270   : > { %v620_v5 = vmul.f32 %v1010_v3, %v998_v41 }
 0x288   : > { %v617_v2 = vpop.xlane.xlu2 %616 }
 0x289   : > { %1011 = vrcp.f32 %v617_v2 }
 0x28f   : > { %v1012_v4 = vpop.eup %1011 }
 0x290   : > { %v621_v6 = vmul.f32 %v1012_v4, %v1000_v46 }
 0x292   : > { %v622_v7 = vpack.c.bf16 %v621_v6, %v620_v5 }
 0x294   : > { %887 = vmatmul.msk.bf16.vlgmr.msra.gmra.mxu3 %vm507_vm4, %v622_v7 }
 0x298   : > { %v707_v8 = vpop.xlane.xlu1 %706 }
 0x299   : > { %1013 = vrcp.f32 %v707_v8 }
 0x29f   : > { %v1014_v10 = vpop.eup %1013 }
 0x2a0   : > { %v711_v12 = vmul.f32 %v1014_v10, %v1002_v51 }
 0x2a8   : > { %v704_v9 = vpop.xlane.xlu0 %703 }
 0x2a9   : > { %1015 = vrcp.f32 %v704_v9 }
 0x2af   : > { %v1016_v11 = vpop.eup %1015 }
 0x2b0   : > { %v710_v13 = vmul.f32 %v1016_v11, %v1004_v56 }
 0x2b2   : > { %v712_v14 = vpack.c.bf16 %v711_v12, %v710_v13 }
 0x2b4   : > { %890 = vmatmul.msk.bf16.vlgmr.msrb.gmra.mxu2 %vm507_vm4, %v712_v14 }
 0x2ec   : > { %v544_v16 = vpop.f32.mrf.mxu2 }
 0x2ed   : > { %v554_v24 = vsel %vm1314_vm12, %v544_v16, 0.0 }
 0x2f4   : > { %v546_v18 = vpop.f32.mrf.mxu2 }
 0x2f5   : > { %v555_v33 = vsel %vm1314_vm12, %v546_v18, 0.0 }
 0x317   : > { %v636_v19 = vpop.f32.mrf.mxu3 }
 0x318   : > { %v646_v23 = vsel %vm645_vm11, %v636_v19, 0.0 }
 0x319   : > { %v648_v25 = vadd.f32 %v646_v23, %v554_v24 }
 0x31f   : > { %v638_v29 = vpop.f32.mrf.mxu3 }
 0x320   : > { %v647_v32 = vsel %vm645_vm11, %v638_v29, 0.0 }
 0x321   : > { %v649_v34 = vadd.f32 %v647_v32, %v555_v33 }
 0x337   : > { %v726_v26 = vpop.f32.mrf.mxu2 }
 0x338   : > { %v736_v27 = vsel %vm735_vm13, %v726_v26, 0.0 }
 0x339   : > { %v738_v30 = vadd.f32 %v736_v27, %v648_v25 }
 0x33b   : > { %v742_v31 = vadd.f32 %v740_v28, %v738_v30 }
 0x33d   : > { %745 = vst.msk [vmem:[%s1307_s10] sm:$0xff] %vm379_vm10, %v742_v31 }
 0x33f   : > { %v728_v35 = vpop.f32.mrf.mxu2 }
 0x340   : > { %v737_v36 = vsel %vm735_vm13, %v728_v35, 0.0 }
 0x341   : > { %v739_v38 = vadd.f32 %v737_v36, %v649_v34 }
 0x343   : > { %v743_v39 = vadd.f32 %v741_v37, %v739_v38 }
 0x345   : > { %746 = vst.msk [vmem:[%s1307_s10 + $0x8] sm:$0xff] %vm379_vm10, %v743_v39 }
 0x346   : > { %1074 = shalt.err (!%p1071_p0)
}
 0x347   : > { %s1138_s30 = smov 128   ;;  %s1139_s10 = smov 8  }
 0x348   : > { %919 = dma.vmem_to_hbm [thread:$0]  (%p1220_p4), %s761_s8, 256, %s763_s12, %s748_s27, %s1138_s30, %s1138_s30, %s1139_s10  }
 0x349 PF: > { %p931_p1 = scmp.ge.s32.totalorder %s1129_s29, 2  ;;  %s777_s23 = sand.u32 1, %s1109_s24  }
 0x34a   : > { %s778_s20 = scalar_lea.sflag [#allocation5], %s777_s23 }
 0x34b   : > { %p926_p2 = pnand %p931_p1, %p1227_p8 }
 0x34d   : > { %p927_p3 = pneg %p926_p2 }
 0x34f   : > { %1104 = dma.done.wait (%p927_p3), %s778_s20, 256  }
 0x350   : > { %1106 = vsyncadd (%p927_p3), %s778_s20, 4294967040  ;;  %s21_s29 = sadd.s32 1, %s1129_s29   ;;  %s1381_s24 = smov %s1113_s25 }
 0x351   : > { %p18_p5 = scmp.ge.s32.totalorder %s21_s29, 4   ;;  %s1382_s25 = smov %s1117_s26 }
 0x352   : > { %s1383_s26 = smov %s1233_s14  ;;  %s1384_s27 = smov %s1125_s28 }
 0x353   : > { %s1385_s28 = smov %s1387_s9  ;;  %20 = sbr.rel (!%p18_p5) target bundleno = 5 (0x5), region = 97 }
 0x358   :  { %784 = vsyncpa [#allocation4], 1 }
 0x359   :  { %786 = vsyncpa [#allocation4 + $0x1], 1 }
 0x35a   :  { %787 = vsyncpa [#allocation5], 1 }
 0x35b   :  { %789 = vsyncpa [#allocation5 + $0x1], 1 }

</bundles_post_ra>
